<compile_context>
chip_gen: v6e
topology: v6e:2x2x1
jax: 0.10.0
libtpu: 0.0.40
codegen_flags: <defaults>
</compile_context>

<pallas_src>
import jax
import jax.numpy as jnp
from jax.experimental import pallas as pl
from jax.experimental.pallas import tpu as pltpu


def odefunc_kernel(x_ref,      # VMEM (1, N, T*F)  x[b] (flattened trailing dims)
                   x0_ref,     # VMEM (1, N, T*F)  x0[b]
                   adj_ref,    # VMEM (N, N)       sigmoid(alpha)/2 * adj
                   wmix_ref,   # VMEM (T*F, T*F)   kron(I_T, w_eff) + kron(w2_eff, I_F)
                   o_ref):     # VMEM (1, N, T*F)
    x_b = x_ref[0]                                                    # (N, T*F)

    # node mixing (alpha/2 already folded into adj rows)
    xa = jnp.dot(adj_ref[...], x_b, preferred_element_type=jnp.float32)
    # fused feature + temporal mixing on the flattened (t, f) axis
    xmix = jnp.dot(x_b, wmix_ref[...], preferred_element_type=jnp.float32)

    o_ref[0] = (xa + xmix - 3.0 * x_b + x0_ref[0]).astype(o_ref.dtype)


def odefunc_forward(x, x0, adj, alpha, w, d, w2, d2):
    """x, x0: (B, N, T, F) float32 (matches the PyTorch module's layout)."""
    B, N, T, F = x.shape
    TF = T * F

    # --- parameter preprocessing (tiny, plain-JAX glue on parameter-sized data) ---
    half_alpha = (jax.nn.sigmoid(alpha) * 0.5).astype(jnp.float32)            # (N,)
    adj_scaled = (half_alpha[:, None] * adj).astype(jnp.float32)              # (N, N)
    w_eff = jnp.dot(w * jnp.clip(d, 0.0, 1.0), w.T).astype(jnp.float32)       # (F, F)
    w2_eff = jnp.dot(w2 * jnp.clip(d2, 0.0, 1.0), w2.T).astype(jnp.float32)   # (T, T)
    # fused (t, f) mixing matrix: xw + xw2 == x_flat @ w_mix
    w_mix = (jnp.kron(jnp.eye(T, dtype=jnp.float32), w_eff)
             + jnp.kron(w2_eff, jnp.eye(F, dtype=jnp.float32)))               # (TF, TF)

    # native layout, only fold the contiguous trailing dims (no transposes)
    x_flat = x.reshape(B, N, TF).astype(jnp.float32)
    x0_flat = x0.reshape(B, N, TF).astype(jnp.float32)

    out_flat = pl.pallas_call(
        odefunc_kernel,
        out_shape=jax.ShapeDtypeStruct((B, N, TF), jnp.float32),
        grid_spec=pltpu.PrefetchScalarGridSpec(
            num_scalar_prefetch=0,
            grid=(B,),
            in_specs=[
                pl.BlockSpec((1, N, TF), lambda b: (b, 0, 0)),   # x[b]
                pl.BlockSpec((1, N, TF), lambda b: (b, 0, 0)),   # x0[b]
                pl.BlockSpec((N, N), lambda b: (0, 0)),          # adj_scaled
                pl.BlockSpec((TF, TF), lambda b: (0, 0)),        # w_mix
            ],
            out_specs=pl.BlockSpec((1, N, TF), lambda b: (b, 0, 0)),
        ),
        compiler_params=pltpu.CompilerParams(
            dimension_semantics=("parallel",)),
    )(x_flat, x0_flat, adj_scaled, w_mix)

    return out_flat.reshape(B, N, T, F)


def odefunc_reference(x, x0, adj, alpha, w, d, w2, d2):
    """Pure-JAX reference mirroring the PyTorch forward."""
    hp = jax.lax.Precision.HIGHEST
    a = jax.nn.sigmoid(alpha)[None, :, None, None]
    xa = jnp.einsum('ij,kjlm->kilm', adj, x, precision=hp)
    w_eff = jnp.dot(w * jnp.clip(d, 0.0, 1.0), w.T, precision=hp)
    xw = jnp.einsum('ijkl,lm->ijkm', x, w_eff, precision=hp)
    w2_eff = jnp.dot(w2 * jnp.clip(d2, 0.0, 1.0), w2.T, precision=hp)
    xw2 = jnp.einsum('ijkl,km->ijml', x, w2_eff, precision=hp)
    return a / 2 * xa - x + xw - x + xw2 - x + x0


if __name__ == "__main__":
    B, N, T, F = 2, 16, 8, 4   # batch, num_nodes, temporal_dim, feature_dim

    key = jax.random.PRNGKey(0)
    k_adj, k_x, k_x0, k_w, k_d, k_w2, k_d2 = jax.random.split(key, 7)

    # module inputs / state
    adj = jax.random.uniform(k_adj, (N, N), dtype=jnp.float32) / N
    x = jax.random.normal(k_x, (B, N, T, F), dtype=jnp.float32)
    x0 = jax.random.normal(k_x0, (B, N, T, F), dtype=jnp.float32)   # self.x0

    # parameters: shapes from __init__, deterministically perturbed so that
    # clamp / sigmoid / both mixings are numerically exercised.
    alpha = 0.8 * jnp.ones((N,), jnp.float32)
    w = jnp.eye(F, dtype=jnp.float32) + 0.05 * jax.random.normal(k_w, (F, F), jnp.float32)
    d = jnp.ones((F,), jnp.float32) + 0.3 * jax.random.normal(k_d, (F,), jnp.float32)
    w2 = jnp.eye(T, dtype=jnp.float32) + 0.05 * jax.random.normal(k_w2, (T, T), jnp.float32)
    d2 = jnp.ones((T,), jnp.float32) + 0.3 * jax.random.normal(k_d2, (T,), jnp.float32)

    out = odefunc_forward(x, x0, adj, alpha, w, d, w2, d2)
    out = jax.block_until_ready(out)

    ref = odefunc_reference(x, x0, adj, alpha, w, d, w2, d2)
    assert out.shape == ref.shape == (B, N, T, F)
    assert jnp.allclose(out, ref, atol=1e-3, rtol=1e-3), (
        f"max abs err = {jnp.max(jnp.abs(out - ref))}")

    print("KERNEL_OK")
</pallas_src>

<mosaic_0001>
module attributes {stable_mosaic.version = 11 : i64} {
  func.func @odefunc_kernel(%arg0: i32, %arg1: memref<1x16x32xf32, #tpu.memory_space<vmem>>, %arg2: memref<1x16x32xf32, #tpu.memory_space<vmem>>, %arg3: memref<16x16xf32, #tpu.memory_space<vmem>>, %arg4: memref<32x32xf32, #tpu.memory_space<vmem>>, %arg5: memref<1x16x32xf32, #tpu.memory_space<vmem>>) attributes {dimension_semantics = [#tpu.dimension_semantics<parallel>], iteration_bounds = array<i64: 2>, scalar_prefetch = 0 : i64, scratch_operands = 0 : i64, tpu.core_type = #tpu.core_type<tc>, window_params = [{transform_indices = @transform_0, window_bounds = array<i64: 1, 16, 32>}, {transform_indices = @transform_1, window_bounds = array<i64: 1, 16, 32>}, {pipeline_mode = #tpu.pipeline_mode<synchronous>, transform_indices = @transform_2, window_bounds = array<i64: 16, 16>}, {pipeline_mode = #tpu.pipeline_mode<synchronous>, transform_indices = @transform_3, window_bounds = array<i64: 32, 32>}, {transform_indices = @transform_4, window_bounds = array<i64: 1, 16, 32>}]} {
    %c0 = arith.constant 0 : index
    %c0_0 = arith.constant 0 : index
    %c0_1 = arith.constant 0 : index
    %0 = vector.load %arg1[%c0, %c0_0, %c0_1] : memref<1x16x32xf32, #tpu.memory_space<vmem>>, vector<1x16x32xf32>
    %1 = vector.shape_cast %0 : vector<1x16x32xf32> to vector<16x32xf32>
    %c0_2 = arith.constant 0 : index
    %c0_3 = arith.constant 0 : index
    %2 = vector.load %arg3[%c0_2, %c0_3] : memref<16x16xf32, #tpu.memory_space<vmem>>, vector<16x16xf32>
    %cst = arith.constant dense<0.000000e+00> : vector<16x32xf32>
    %3 = tpu.matmul %2, %1, %cst {dimension_numbers = #tpu.dot_dimension_numbers<[1], [0], [0], [1], [0, 0, 1, 1], [], []>} : vector<16x16xf32>, vector<16x32xf32>, vector<16x32xf32> -> vector<16x32xf32>
    %c0_4 = arith.constant 0 : index
    %c0_5 = arith.constant 0 : index
    %4 = vector.load %arg4[%c0_4, %c0_5] : memref<32x32xf32, #tpu.memory_space<vmem>>, vector<32x32xf32>
    %cst_6 = arith.constant dense<0.000000e+00> : vector<16x32xf32>
    %5 = tpu.matmul %1, %4, %cst_6 {dimension_numbers = #tpu.dot_dimension_numbers<[1], [0], [0], [1], [0, 0, 1, 1], [], []>} : vector<16x32xf32>, vector<32x32xf32>, vector<16x32xf32> -> vector<16x32xf32>
    %6 = arith.addf %3, %5 : vector<16x32xf32>
    %cst_7 = arith.constant 3.000000e+00 : f32
    %7 = vector.broadcast %cst_7 : f32 to vector<16x32xf32>
    %8 = arith.mulf %7, %1 : vector<16x32xf32>
    %9 = arith.subf %6, %8 : vector<16x32xf32>
    %c0_8 = arith.constant 0 : index
    %c0_9 = arith.constant 0 : index
    %c0_10 = arith.constant 0 : index
    %10 = vector.load %arg2[%c0_8, %c0_9, %c0_10] : memref<1x16x32xf32, #tpu.memory_space<vmem>>, vector<1x16x32xf32>
    %11 = vector.shape_cast %10 : vector<1x16x32xf32> to vector<16x32xf32>
    %12 = arith.addf %9, %11 : vector<16x32xf32>
    %c0_11 = arith.constant 0 : index
    %c0_12 = arith.constant 0 : index
    %c0_13 = arith.constant 0 : index
    %13 = vector.load %arg5[%c0_11, %c0_12, %c0_13] : memref<1x16x32xf32, #tpu.memory_space<vmem>>, vector<1x16x32xf32>
    %14 = vector.shape_cast %13 : vector<1x16x32xf32> to vector<16x32xf32>
    %15 = vector.shape_cast %12 : vector<16x32xf32> to vector<1x16x32xf32>
    tpu.vector_store %arg5[%c0_11, %c0_12, %c0_13], %15 {strides = array<i32>} : memref<1x16x32xf32, #tpu.memory_space<vmem>>, vector<1x16x32xf32>,
    return
  }
  func.func @transform_0(%arg0: i32) -> (i32, i32, i32) {
    %c0_i32 = arith.constant 0 : i32
    %c0_i32_0 = arith.constant 0 : i32
    %c0_i32_1 = arith.constant 0 : i32
    return %arg0, %c0_i32, %c0_i32_0 : i32, i32, i32
  }
  func.func @transform_1(%arg0: i32) -> (i32, i32, i32) {
    %c0_i32 = arith.constant 0 : i32
    %c0_i32_0 = arith.constant 0 : i32
    %c0_i32_1 = arith.constant 0 : i32
    return %arg0, %c0_i32, %c0_i32_0 : i32, i32, i32
  }
  func.func @transform_2(%arg0: i32) -> (i32, i32) {
    %c0_i32 = arith.constant 0 : i32
    %c0_i32_0 = arith.constant 0 : i32
    %c0_i32_1 = arith.constant 0 : i32
    return %c0_i32, %c0_i32_0 : i32, i32
  }
  func.func @transform_3(%arg0: i32) -> (i32, i32) {
    %c0_i32 = arith.constant 0 : i32
    %c0_i32_0 = arith.constant 0 : i32
    %c0_i32_1 = arith.constant 0 : i32
    return %c0_i32, %c0_i32_0 : i32, i32
  }
  func.func @transform_4(%arg0: i32) -> (i32, i32, i32) {
    %c0_i32 = arith.constant 0 : i32
    %c0_i32_0 = arith.constant 0 : i32
    %c0_i32_1 = arith.constant 0 : i32
    return %arg0, %c0_i32, %c0_i32_0 : i32, i32, i32
  }
}

</mosaic_0001>

<bundles_post_ra>
// kernel: tpu_custom_call.1
= control target key start
LH: loop header
LB: loop body
LE: loop exit
PB: predicated region body
PF: predicated region fallthrough
CT: control target
= control target key end

     0   :  { %s1210_s0 = inlined_call_operand.hbm [shape: f32[2,16,32], index: 0, kind: input, shape index: {}]   ;;  %s1211_s1 = inlined_call_operand.hbm [shape: f32[2,16,32], index: 1, kind: input, shape index: {}]   ;;  %s1212_s2 = inlined_call_operand.hbm [shape: f32[16,16], index: 2, kind: input, shape index: {}]   ;;  %s1213_s3 = inlined_call_operand.hbm [shape: f32[32,32], index: 3, kind: input, shape index: {}]   ;;  %s1214_s4 = inlined_call_operand.hbm [shape: f32[2,16,32], index: 4, kind: output, shape index: {}]  }
   0x1   :  { %1222 = sst [smem:[#allocation16_spill]] %s1210_s0 }
   0x2   :  { %9 = vsyncpa [#allocation3], 0 }
   0x3   :  { %11 = vsyncpa [#allocation3 + $0x1], 0 }
   0x4   :  { %12 = vsyncpa [#allocation6], 0 }
   0x5   :  { %14 = vsyncpa [#allocation6 + $0x1], 0 }
   0x6   :  { %15 = vsyncpa [#allocation9], 0 }
   0x7   :  { %16 = vsyncpa [#allocation4], 0 }
   0x8   :  { %18 = vsyncpa [#allocation4 + $0x1], 0  ;;  %s949_s15 = smov 0   ;;  %s951_s16 = smov 0  }
   0x9   :  { %s953_s17 = smov 0   ;;  %s955_s18 = smov 0  }
   0xa LB: > { %s970_s19 = sadd.s32 4294967295, %s913_s18   ;;  %s596_s20 = sadd.s32 4294967294, %s913_s18   ;;  %s913_s18 = sphi %s955_s18, %s1243_s18   ;;  %s909_s17 = sphi %s953_s17, %s1242_s17   ;;  %s905_s16 = sphi %s951_s16, %s1241_s16   ;;  %s901_s15 = sphi %s949_s15, %s1240_s15  }
   0xb   : > { %p44_p0 = scmp.ne.s32.totalorder %s905_s16, %s901_s15  ;;  %p1219_p1 = scmp.eq.s32.totalorder %s970_s19, 0 }
   0xc   : > { %p136_p2 = scmp.eq.s32.totalorder %s970_s19, 1  ;;  %p142_p3 = scmp.eq.s32.totalorder %s596_s20, 1 }
   0xd   : > { %p979_p4 = por %p1219_p1, %p44_p0  ;;  %p597_p5 = scmp.ge.s32.totalorder %s913_s18, 1 }
   0xe   : > { %p984_p6 = por %p142_p3, %p44_p0  ;;  %p149_p7 = scmp.lt.s32.totalorder %s913_s18, 3 }
   0xf   : > { %s1223_s21 = scalar_select %p979_p4, 1, 0 }
  0x10   : > { %s1224_s22 = scalar_select %p984_p6, 1, 0 }
  0x11   : > { %p989_p8 = pnand %p597_p5, %p149_p7  ;;  %s915_s24 = smov [#allocation7]  }
  0x12   : > { %s161_s25 = sshll.u32 %s915_s24, 4  ;;  %s916_s27 = smov [#allocation8]   ;;  %s162_s25 = int_to_ptr.vmem [resolvable:$true] %s161_s25 }
  0x13   : > { %p667_p9 = pneg %p989_p8  ;;  %s174_s28 = sshll.u32 %s916_s27, 4  ;;  %s175_s28 = int_to_ptr.vmem [resolvable:$true] %s174_s28 }
  0x14   : > { %s740_s29 = scalar_lea.vmem %s162_s25, 256  ;;  %p748_p5 = scmp.lt.s32.totalorder %s162_s25, %s162_s25 }
  0x15   : > { %p998_p11 = pnand %p667_p9, %p1219_p1  ;;  %p741_p13 = scmp.ne.s32.totalorder %s162_s25, %s740_s29 }
  0x16   : > { %p749_p7 = scmp.lt.s32.totalorder %s740_s29, %s740_s29 }
  0x17   : > { %p731_p12 = pneg %p998_p11 }
  0x18   : > { %p750_p10 = por %p749_p7, %p748_p5 }
  0x19   : > { %p743_p0 = pnand %p741_p13, %p731_p12 }
  0x1b   : > { %p744_p3 = pneg %p743_p0 }
  0x1d   : > { %p751_p9 = pnand %p750_p10, %p744_p3 }
  0x1f   : > { %754 = shalt.err (!%p751_p9)
}
  0x20   : > { %s1215_s30 = smov 128   ;;  %s1217_s5 = smov 8  }
  0x21   : > { %670 = dma.hbm_to_vmem [thread:$0]  (!%p998_p11), %s1212_s2, 256, %s162_s25, [#allocation6], %s1215_s30, %s1215_s30, %s1217_s5  }
  0x22   : > { %s766_s8 = scalar_lea.vmem %s175_s28, 512  ;;  %p774_p10 = scmp.lt.s32.totalorder %s175_s28, %s175_s28 }
  0x23   : > { %p767_p13 = scmp.ne.s32.totalorder %s175_s28, %s766_s8  ;;  %p775_p3 = scmp.lt.s32.totalorder %s766_s8, %s766_s8 }
  0x25   : > { %p769_p0 = pnand %p767_p13, %p731_p12  ;;  %p776_p7 = por %p775_p3, %p774_p10 }
  0x27   : > { %p770_p5 = pneg %p769_p0 }
  0x29   : > { %p777_p9 = pnand %p776_p7, %p770_p5 }
  0x2b   : > { %780 = shalt.err (!%p777_p9)
}
  0x2c   : > { %673 = dma.hbm_to_vmem [thread:$0]  (!%p998_p11), %s1213_s3, 512, %s175_s28, [#allocation9], %s1215_s30, %s1215_s30, %s1217_s5  }
  0x2d   : > { %s1027_s11 = sadd.s32 1, %s913_s18   ;;  %s31_s12 = sadd.s32 1, %s909_s17 }
  0x2e   : > { %s28_s13 = ssub.s32 %s913_s18, %s1027_s11  ;;  %p38_p12 = scmp.ne.s32.totalorder %s909_s17, %s905_s16 }
  0x2f   : > { %p29_p13 = scmp.eq.s32.totalorder %s28_s13, 0  ;;  %p39_p0 = scmp.eq.s32.totalorder %s913_s18, 0 }
  0x30   : > { %p1037_p5 = por %p136_p2, %p38_p12  ;;  %p687_p10 = scmp.lt.s32.totalorder %s913_s18, 2 }
  0x31   : > { %s1043_s20 = scalar_select %p29_p13, %s909_s17, %s31_s12  }
  0x32   : > { %s1227_s14 = scalar_select %p1037_p5, 1, 0 }
  0x33   : > { %p40_p3 = por %p39_p0, %p38_p12  ;;  %s188_s24 = sand.u32 1, %s909_s17  }
  0x34   : > { %s601_s25 = sshll.u32 %s188_s24, 4  ;;  %s622_s26 = sshll.u32 %s913_s18, 8 }
  0x35   : > { %s1228_s0 = sld [smem:[#allocation16_spill]]  ;;  %s192_s6 = scalar_lea.vmem [#allocation2], %s601_s25 }
  0x36   : > { %s199_s7 = sshll.u32 %s192_s6, 4  ;;  %p1054_p2 = pnand %p687_p10, %p40_p3  ;;  %s1052_s7 = int_to_ptr.vmem [resolvable:$true] %s199_s7 }
  0x37   : > { %s1061_s12 = scalar_lea.hbm %s1211_s1, %s622_s26  ;;  %s213_s13 = scalar_lea.vmem [#allocation5], %s601_s25 }
  0x38   : > { %s1063_s27 = sshll.u32 %s213_s13, 4  ;;  %s1065_s28 = scalar_lea.sflag [#allocation3], %s188_s24  ;;  %s1096_s27 = int_to_ptr.vmem [resolvable:$true] %s1063_s27 }
  0x39   : > { %p783_p7 = pneg %p1054_p2 }
  0x3b   : > { %s1050_s29 = scalar_lea.hbm %s1228_s0, %s622_s26  ;;  %s786_s9 = scalar_lea.hbm %s1228_s0, 512 }
  0x3c   : > { %s781_s30 = scalar_lea.hbm %s1050_s29, 256  ;;  %p787_p13 = scmp.lt.s32.totalorder %s1050_s29, %s1228_s0 }
  0x3d   : > { %p782_p11 = scmp.ne.s32.totalorder %s1050_s29, %s781_s30  ;;  %p788_p0 = scmp.lt.s32.totalorder %s786_s9, %s781_s30 }
  0x3f   : > { %p784_p9 = pnand %p783_p7, %p782_p11  ;;  %p789_p10 = por %p788_p0, %p787_p13 }
  0x41   : > { %p785_p12 = pneg %p784_p9 }
  0x43   : > { %p790_p3 = pnand %p789_p10, %p785_p12 }
  0x45   : > { %793 = shalt.err (!%p790_p3)
}
  0x46   : > { %s794_s24 = scalar_lea.vmem %s1052_s7, 256  ;;  %s919_s5 = smov [#allocation2]  }
  0x47   : > { %p795_p1 = scmp.ne.s32.totalorder %s1052_s7, %s794_s24  ;;  %s799_s25 = sshll.u32 %s919_s5, 4  ;;  %s800_s25 = int_to_ptr.vmem [resolvable:$false] %s799_s25 }
  0x48   : > { %s801_s13 = scalar_lea.vmem %s800_s25, 512  ;;  %p802_p6 = scmp.lt.s32.totalorder %s1052_s7, %s800_s25 }
  0x49   : > { %p797_p11 = pnand %p795_p1, %p783_p7  ;;  %p803_p5 = scmp.lt.s32.totalorder %s801_s13, %s794_s24 }
  0x4b   : > { %p798_p9 = pneg %p797_p11  ;;  %p804_p4 = por %p803_p5, %p802_p6 }
  0x4d   : > { %p805_p13 = pnand %p804_p4, %p798_p9 }
  0x4f   : > { %808 = shalt.err (!%p805_p13)
}
  0x50   : > { %s1230_s30 = smov 8   ;;  %s1231_s6 = smov 128  }
  0x51   : > { %677 = dma.hbm_to_vmem [thread:$0]  (!%p1054_p2), %s1050_s29, 256, %s1052_s7, %s1065_s28, %s1231_s6, %s1231_s6, %s1230_s30  }
  0x52   : > { %s209_s9 = sand.u32 1, %s913_s18   ;;  %s809_s26 = scalar_lea.hbm %s1061_s12, 256 }
  0x53   : > { %s210_s10 = scalar_lea.sflag [#allocation6], %s209_s9  ;;  %p810_p1 = scmp.ne.s32.totalorder %s1061_s12, %s809_s26 }
  0x54   : > { %s814_s25 = scalar_lea.hbm %s1211_s1, 512  ;;  %p815_p5 = scmp.lt.s32.totalorder %s1061_s12, %s1211_s1 }
  0x55   : > { %p812_p4 = pnand %p810_p1, %p783_p7  ;;  %p816_p12 = scmp.lt.s32.totalorder %s814_s25, %s809_s26 }
  0x57   : > { %p813_p6 = pneg %p812_p4  ;;  %p817_p0 = por %p816_p12, %p815_p5 }
  0x59   : > { %p818_p10 = pnand %p817_p0, %p813_p6 }
  0x5b   : > { %821 = shalt.err (!%p818_p10)
}
  0x5c   : > { %s822_s29 = scalar_lea.vmem %s1096_s27, 256  ;;  %s920_s7 = smov [#allocation5]  }
  0x5d   : > { %p823_p3 = scmp.ne.s32.totalorder %s1096_s27, %s822_s29  ;;  %s827_s28 = sshll.u32 %s920_s7, 4  ;;  %s828_s28 = int_to_ptr.vmem [resolvable:$false] %s827_s28 }
  0x5e   : > { %s829_s9 = scalar_lea.vmem %s828_s28, 512  ;;  %p830_p13 = scmp.lt.s32.totalorder %s1096_s27, %s828_s28 }
  0x5f   : > { %p825_p11 = pnand %p823_p3, %p783_p7  ;;  %p831_p1 = scmp.lt.s32.totalorder %s829_s9, %s822_s29 }
  0x61   : > { %p826_p9 = pneg %p825_p11  ;;  %p832_p4 = por %p831_p1, %p830_p13 }
  0x63   : > { %p833_p5 = pnand %p832_p4, %p826_p9 }
  0x65   : > { %836 = shalt.err (!%p833_p5)
}
  0x66   : > { %680 = dma.hbm_to_vmem [thread:$0]  (!%p1054_p2), %s1061_s12, 256, %s1096_s27, %s210_s10, %s1231_s6, %s1231_s6, %s1230_s30  }
  0x67   : > { %232 = sbr.rel (%p989_p8) target bundleno = 343 (0x157), region = 36  ;;  %s1127_s0 = sand.u32 (!%p989_p8), 1, %s905_s16  }
  0x68   : > { %s1130_s26 = sshll.u32 (!%p989_p8), %s1127_s0, 4  ;;  %s235_s24 = scalar_lea.sflag (!%p989_p8), [#allocation3], %s1127_s0 }
  0x69   : > { %s238_s8 = scalar_lea.vmem (!%p989_p8), [#allocation2], %s1130_s26  ;;  %p1232_p7 = scmp.ne.s32.totalorder (!%p989_p8), %s1223_s21, 0 }
  0x6c   : > { %880 = dma.done.wait (%p1232_p7), %s235_s24, 256  }
  0x6d   : > { %882 = vsyncadd (%p1232_p7), %s235_s24, 4294967040  ;;  %s243_s23 = sand.u32 1, %s970_s19   ;;  %s247_s27 = scalar_lea.vmem [#allocation5], %s1130_s26 }
  0x6e   : > { %s244_s12 = scalar_lea.sflag [#allocation6], %s243_s23 }
  0x6f   : > { %884 = dma.done.wait (%p1232_p7), %s244_s12, 256  }
  0x70   : > { %886 = vsyncadd (%p1232_p7), %s244_s12, 4294967040  ;;  %p1233_p8 = scmp.eq.s32.totalorder %s970_s19, 0 }
  0x72   : > { %888 = dma.done.wait (%p1233_p8), [#allocation6], 256   ;;  %p1234_p2 = pmov %p1233_p8 }
  0x74   : > { %890 = vsyncadd (%p1234_p2), [#allocation6], 4294967040  ;;  %p1235_p6 = pmov %p1234_p2 }
  0x75   : > { %p1236_p12 = pmov %p1234_p2 }
  0x76   : > { %892 = dma.done.wait (%p1235_p6), [#allocation9], 512  }
  0x77   : > { %894 = vsyncadd (%p1236_p12), [#allocation9], 4294966784  ;;  %v292_v0 = vld [vmem:[#allocation8 + $0x18] sm:$0xff]  ;;  %v291_v1 = vld [vmem:[#allocation8 + $0x10] sm:$0xff]  ;;  %vm375_vm0 = vcmask 130048   ;;  %vm293_vm1 = vcmask 261120  }
  0x78   : > { %v286_v2 = vld [vmem:[%s238_s8 + $0x8] sm:$0xff]  ;;  %635 = vmatprep.subr.mxu0 %v292_v0  ;;  %v285_v3 = vld [vmem:[%s238_s8] sm:$0xff]  ;;  %s624_s21 = sshll.u32 %s970_s19, 8  ;;  %s284_s30 = scalar_lea.vmem [#allocation10], %s1130_s26 }
  0x79   : > { %646 = vmatprep.subr.mxu1 %v286_v2  ;;  %636 = vmatpush3.msra.mxu0 %v292_v0  ;;  %v290_v4 = vld [vmem:[#allocation8 + $0x8] sm:$0xff]  ;;  %v287_v5 = vld [vmem:[#allocation7] sm:$0xff]  ;;  %v288_v6 = vld [vmem:[#allocation7 + $0x8] sm:$0xff]  ;;  %v458_v9 = vmul.f32 3.0, %v286_v2  ;;  %v457_v12 = vmul.f32 3.0, %v285_v3  ;;  %s481_s6 = sshll.u32 %s284_s30, 4  ;;  %s1163_s25 = scalar_lea.hbm %s1214_s4, %s624_s21  ;;  %s1165_s6 = int_to_ptr.vmem [resolvable:$true] %s481_s6 }
  0x7a   : > { %647 = vmatpush3.msra.mxu1 %v286_v2  ;;  %637 = vmatprep.subr.mxu0 %v291_v1  ;;  %v289_v7 = vld [vmem:[#allocation8] sm:$0xff]  ;;  %v462_v13 = vld [vmem:[%s247_s27 + $0x8] sm:$0xff]  ;;  %s468_s19 = scalar_lea.sflag [#allocation4], %s1127_s0  ;;  %s837_s13 = scalar_lea.vmem %s1165_s6, 256 }
  0x7b   : > { %648 = vmatprep.subr.mxu1 %v285_v3  ;;  %638 = vmatpush3.msra.mxu0 %v291_v1  ;;  %v461_v18 = vld [vmem:[%s247_s27] sm:$0xff]  ;;  %p838_p0 = scmp.ne.s32.totalorder %s1165_s6, %s837_s13  ;;  %p1237_p10 = scmp.ne.s32.totalorder %s1227_s14, 0 }
  0x7c   : > { %649 = vmatpush3.msra.mxu1 %v285_v3  ;;  %639 = vmatprep.subr.mxu0 %v290_v4  ;;  %s921_s29 = smov [#allocation10]  }
  0x7d   : > { %650 = vmatprep.mubr.msk.f32.mxu1 %vm375_vm0, %v287_v5  ;;  %640 = vmatpush3.msra.mxu0 %v290_v4  ;;  %p839_p3 = pnand %p838_p0, %p1237_p10  ;;  %s841_s7 = sshll.u32 %s921_s29, 4  ;;  %s842_s7 = int_to_ptr.vmem [resolvable:$false] %s841_s7 }
  0x7e   : > { %651 = vmatmul.mubr.msk.f32.vlgmr.msra.gmra.mxu1 %vm375_vm0, %v288_v6  ;;  %641 = vmatprep.subr.mxu0 %v289_v7  ;;  %s843_s28 = scalar_lea.vmem %s842_s7, 512  ;;  %p844_p9 = scmp.lt.s32.totalorder %s1165_s6, %s842_s7 }
  0x7f   : > { %643 = vmatprep.mubr.msk.f32.mxu0 %vm293_vm1, %v285_v3  ;;  %642 = vmatpush3.msra.mxu0 %v289_v7  ;;  %p840_p11 = pneg %p839_p3  ;;  %p845_p13 = scmp.lt.s32.totalorder %s843_s28, %s837_s13 }
  0x80   : > { %644 = vmatmul.mubr.msk.f32.vlgmr.msra.gmra.mxu0 %vm293_vm1, %v286_v2 }
  0x81   : > { %p846_p1 = por %p845_p13, %p844_p9 }
  0x83   : > { %p847_p4 = pnand %p846_p1, %p840_p11 }
 0x13e   : > { %v652_v8 = vpop.f32.mrf.mxu1 }
 0x140   : > { %v645_v10 = vpop.f32.mrf.mxu0  ;;  %v448_v14 = vpop.f32.mrf.mxu1 }
 0x141   : > { %v454_v11 = vadd.f32 %v652_v8, %v645_v10 }
 0x142   : > { %v366_v15 = vpop.f32.mrf.mxu0 }
 0x143   : > { %v460_v16 = vsub.f32 %v454_v11, %v458_v9  ;;  %v449_v17 = vadd.f32 %v448_v14, %v366_v15 }
 0x145   : > { %v464_v19 = vadd.f32 %v462_v13, %v460_v16  ;;  %v459_v20 = vsub.f32 %v449_v17, %v457_v12 }
 0x147   : > { %466 = vst.msk [vmem:[%s284_s30 + $0x8] sm:$0xff] %vm293_vm1, %v464_v19  ;;  %v463_v21 = vadd.f32 %v461_v18, %v459_v20 }
 0x149   : > { %465 = vst.msk [vmem:[%s284_s30] sm:$0xff] %vm293_vm1, %v463_v21 }
 0x14a   : > { %850 = shalt.err (!%p847_p4)
}
 0x14b   : > { %s851_s9 = scalar_lea.hbm %s1163_s25, 256  ;;  %s855_s8 = scalar_lea.hbm %s1214_s4, 512 }
 0x14c   : > { %p852_p5 = scmp.ne.s32.totalorder %s1163_s25, %s851_s9  ;;  %p856_p2 = scmp.lt.s32.totalorder %s1163_s25, %s1214_s4 }
 0x14d   : > { %p857_p6 = scmp.lt.s32.totalorder %s855_s8, %s851_s9 }
 0x14e   : > { %p853_p7 = pnand %p852_p5, %p1237_p10 }
 0x14f   : > { %p858_p12 = por %p857_p6, %p856_p2 }
 0x150   : > { %p854_p8 = pneg %p853_p7 }
 0x152   : > { %p859_p0 = pnand %p858_p12, %p854_p8 }
 0x154   : > { %862 = shalt.err (!%p859_p0)
}
 0x155   : > { %s922_s27 = smov 128   ;;  %s923_s21 = smov 8  }
 0x156   : > { %665 = dma.vmem_to_hbm [thread:$0]  (%p1237_p10), %s1165_s6, 256, %s1163_s25, %s468_s19, %s922_s27, %s922_s27, %s923_s21  }
 0x157 PF: > { %s496_s30 = sand.u32 1, %s901_s15   ;;  %p1238_p3 = scmp.ne.s32.totalorder %s1224_s22, 0 }
 0x158   : > { %p1239_p11 = scmp.ge.s32.totalorder %s913_s18, 2  ;;  %s497_s10 = scalar_lea.sflag [#allocation4], %s496_s30 }
 0x15a   : > { %p682_p9 = pnand %p1239_p11, %p1238_p3 }
 0x15c   : > { %p683_p13 = pneg %p682_p9 }
 0x15e   : > { %896 = dma.done.wait (%p683_p13), %s497_s10, 256  }
 0x15f   : > { %898 = vsyncadd (%p683_p13), %s497_s10, 4294967040  ;;  %p21_p1 = scmp.ge.s32.totalorder %s1027_s11, 4   ;;  %s1240_s15 = smov %s905_s16 }
 0x160   : > { %s1241_s16 = smov %s909_s17  ;;  %s1242_s17 = smov %s1043_s20 }
 0x161   : > { %s1243_s18 = smov %s1027_s11  ;;  %23 = sbr.rel (!%p21_p1) target bundleno = 10 (0xa), region = 102 }
 0x166   :  { %502 = vsyncpa [#allocation3], 1 }
 0x167   :  { %504 = vsyncpa [#allocation3 + $0x1], 1 }
 0x168   :  { %505 = vsyncpa [#allocation6], 1 }
 0x169   :  { %507 = vsyncpa [#allocation6 + $0x1], 1 }
 0x16a   :  { %508 = vsyncpa [#allocation9], 1 }
 0x16b   :  { %509 = vsyncpa [#allocation4], 1 }
 0x16c   :  { %511 = vsyncpa [#allocation4 + $0x1], 1 }

</bundles_post_ra>
